<compile_context>
chip_gen: v7x
topology: tpu7x:2x2x1
jax: 0.10.0
libtpu: 0.0.40
codegen_flags: <defaults>
</compile_context>

<pallas_src>
import functools

import jax
import jax.numpy as jnp
from jax import lax
from jax.experimental import pallas as pl
from jax.experimental.pallas import tpu as pltpu


_MAX_TILE_ROWS = 1024  # 1024 x 512 x 4 B = 2 MiB per input tile


def _round_up(x, m):
    return ((x + m - 1) // m) * m


def _mse_partial_kernel(s_ref, t_ref, out_ref, *, total_rows, tile_rows, ragged):
    s = s_ref[...].astype(jnp.float32)
    t = t_ref[...].astype(jnp.float32)
    # torch.where(x <= -100.0, 0, x) on each tensor
    s = jnp.where(s <= -100.0, 0.0, s)
    t = jnp.where(t <= -100.0, 0.0, t)
    d = s - t
    if ragged:
        # The last grid block over-reads past the end of the row axis; those
        # padded rows hold unspecified data, so zero their contribution.
        row = lax.broadcasted_iota(jnp.int32, d.shape, 0)
        valid_rows = total_rows - pl.program_id(0) * tile_rows
        d = jnp.where(row < valid_rows, d, 0.0)
    partial = jnp.sum(d * d)  # one reduce per ~512K-element tile (amortized)
    out_ref[...] = jnp.full(out_ref.shape, partial, dtype=jnp.float32)


def attention_mse(student_atts, teacher_atts):
    assert student_atts.shape == teacher_atts.shape
    bsz, layer_num, head, max_len, max_len2 = student_atts.shape
    assert max_len == max_len2

    n = bsz * layer_num * head * max_len * max_len
    inv_count = 1.0 / float(n)

    s_flat = student_atts.reshape(-1)
    t_flat = teacher_atts.reshape(-1)

    # Widest lane-dense slab width that divides n (no padding copy needed);
    # only fall back to a zero-pad when n is not a multiple of 128.
    for w in (512, 256, 128):
        if n % w == 0:
            n_used = n
            break
    else:
        w = 512
        n_used = _round_up(n, w)
        pad = n_used - n
        s_flat = jnp.pad(s_flat, (0, pad))
        t_flat = jnp.pad(t_flat, (0, pad))

    rows = n_used // w
    s2 = s_flat.reshape(rows, w)
    t2 = t_flat.reshape(rows, w)

    # Full-extent block when it fits (no 8-row divisibility constraint then);
    # otherwise fixed 1024-row tiles with an in-kernel mask on the last block.
    tile_rows = rows if rows <= _MAX_TILE_ROWS else _MAX_TILE_ROWS
    num_blocks = pl.cdiv(rows, tile_rows)
    ragged = (rows % tile_rows) != 0

    kernel = functools.partial(
        _mse_partial_kernel,
        total_rows=rows,
        tile_rows=tile_rows,
        ragged=ragged,
    )

    itemsize = jnp.dtype(student_atts.dtype).itemsize
    cost = pl.CostEstimate(
        flops=5 * n,
        transcendentals=0,
        bytes_accessed=2 * n_used * itemsize + num_blocks * 8 * 128 * 4,
    )

    partials = pl.pallas_call(
        kernel,
        out_shape=jax.ShapeDtypeStruct((num_blocks, 8, 128), jnp.float32),
        grid_spec=pltpu.PrefetchScalarGridSpec(
            num_scalar_prefetch=0,
            grid=(num_blocks,),
            in_specs=[
                pl.BlockSpec((tile_rows, w), lambda i: (i, 0)),
                pl.BlockSpec((tile_rows, w), lambda i: (i, 0)),
            ],
            out_specs=pl.BlockSpec((1, 8, 128), lambda i: (i, 0, 0)),
        ),
        compiler_params=pltpu.CompilerParams(
            dimension_semantics=("parallel",),
            vmem_limit_bytes=32 * 1024 * 1024,
        ),
        cost_estimate=cost,
    )(s2, t2)

    # Tiny cross-block reduction + mean scale in the wrapper.
    return jnp.sum(partials[:, 0, 0]) * inv_count


def attention_mse_ref(student_atts, teacher_atts):
    m = student_atts.shape[-1]
    s = student_atts.reshape(-1, m, m)
    t = teacher_atts.reshape(-1, m, m)
    s = jnp.where(s <= -100.0, jnp.zeros_like(s), s)
    t = jnp.where(t <= -100.0, jnp.zeros_like(t), t)
    return jnp.mean((s - t) ** 2)


def _make_inputs(key, shape):
    k1, k2, k3, k4 = jax.random.split(key, 4)
    student = jax.random.normal(k1, shape, dtype=jnp.float32)
    teacher = jax.random.normal(k2, shape, dtype=jnp.float32)
    # Inject attention-mask-style large negatives so the <= -100 branch is hit.
    mask_s = jax.random.bernoulli(k3, 0.2, shape)
    mask_t = jax.random.bernoulli(k4, 0.2, shape)
    student = jnp.where(mask_s, jnp.full_like(student, -1e4), student)
    teacher = jnp.where(mask_t, jnp.full_like(teacher, -1e4), teacher)
    return student, teacher


def _check(key, shape):
    student, teacher = _make_inputs(key, shape)
    out = jax.block_until_ready(attention_mse(student, teacher))
    ref = jax.block_until_ready(attention_mse_ref(student, teacher))
    assert jnp.allclose(out, ref, rtol=1e-4, atol=1e-6), (shape, out, ref)


if __name__ == "__main__":
    key = jax.random.PRNGKey(0)
    keys = jax.random.split(key, 4)

    # Primary small shape consistent with the module (single aligned block).
    _check(keys[0], (2, 2, 2, 8, 8))
    # Non-multiple-of-128 element count -> zero-pad fallback path.
    _check(keys[1], (1, 3, 2, 10, 10))
    # Aligned width, odd row count, single full-extent block.
    _check(keys[2], (2, 5, 13, 16, 16))
    # Multi-block grid with a ragged last block (in-kernel row mask path).
    _check(keys[3], (4, 12, 11, 32, 32))

    print("KERNEL_OK")
</pallas_src>

<mosaic_0001>
module attributes {stable_mosaic.version = 11 : i64} {
  func.func @_mse_partial_kernel(%arg0: i32, %arg1: memref<1x512xf32, #tpu.memory_space<vmem>>, %arg2: memref<1x512xf32, #tpu.memory_space<vmem>>, %arg3: memref<1x8x128xf32, #tpu.memory_space<vmem>>) attributes {dimension_semantics = [#tpu.dimension_semantics<parallel>], iteration_bounds = array<i64: 1>, scalar_prefetch = 0 : i64, scratch_operands = 0 : i64, tpu.core_type = #tpu.core_type<tc>, window_params = [{transform_indices = @transform_0, window_bounds = array<i64: 1, 512>}, {transform_indices = @transform_1, window_bounds = array<i64: 1, 512>}, {transform_indices = @transform_2, window_bounds = array<i64: 1, 8, 128>}]} {
    %c0 = arith.constant 0 : index
    %c0_0 = arith.constant 0 : index
    %0 = vector.load %arg1[%c0, %c0_0] : memref<1x512xf32, #tpu.memory_space<vmem>>, vector<1x512xf32>
    %c0_1 = arith.constant 0 : index
    %c0_2 = arith.constant 0 : index
    %1 = vector.load %arg2[%c0_1, %c0_2] : memref<1x512xf32, #tpu.memory_space<vmem>>, vector<1x512xf32>
    %cst = arith.constant -1.000000e+02 : f32
    %2 = vector.broadcast %cst : f32 to vector<1x512xf32>
    %3 = arith.cmpf ole, %0, %2 : vector<1x512xf32>
    %cst_3 = arith.constant 0.000000e+00 : f32
    %4 = vector.broadcast %cst_3 : f32 to vector<1x512xf32>
    %5 = arith.select %3, %4, %0 : vector<1x512xi1>, vector<1x512xf32>
    %cst_4 = arith.constant -1.000000e+02 : f32
    %6 = vector.broadcast %cst_4 : f32 to vector<1x512xf32>
    %7 = arith.cmpf ole, %1, %6 : vector<1x512xf32>
    %cst_5 = arith.constant 0.000000e+00 : f32
    %8 = vector.broadcast %cst_5 : f32 to vector<1x512xf32>
    %9 = arith.select %7, %8, %1 : vector<1x512xi1>, vector<1x512xf32>
    %10 = arith.subf %5, %9 : vector<1x512xf32>
    %11 = arith.mulf %10, %10 : vector<1x512xf32>
    %12 = vector.shape_cast %11 : vector<1x512xf32> to vector<1x1x512xf32>
    %cst_6 = arith.constant dense<0.000000e+00> : vector<1xf32>
    %13 = vector.multi_reduction <add>, %12, %cst_6 [1, 2] : vector<1x1x512xf32> to vector<1xf32>
    %14 = vector.shape_cast %13 : vector<1xf32> to vector<1x1x1xf32>
    %15 = vector.extract %14[0, 0, 0] : f32 from vector<1x1x1xf32>
    %16 = vector.broadcast %15 : f32 to vector<1x8x128xf32>
    %c0_7 = arith.constant 0 : index
    %c0_8 = arith.constant 0 : index
    %c0_9 = arith.constant 0 : index
    %17 = vector.load %arg3[%c0_7, %c0_8, %c0_9] : memref<1x8x128xf32, #tpu.memory_space<vmem>>, vector<1x8x128xf32>
    tpu.vector_store %arg3[%c0_7, %c0_8, %c0_9], %16 {strides = array<i32>} : memref<1x8x128xf32, #tpu.memory_space<vmem>>, vector<1x8x128xf32>,
    return
  }
  func.func @transform_0(%arg0: i32) -> (i32, i32) {
    %c0_i32 = arith.constant 0 : i32
    %c0_i32_0 = arith.constant 0 : i32
    return %arg0, %c0_i32 : i32, i32
  }
  func.func @transform_1(%arg0: i32) -> (i32, i32) {
    %c0_i32 = arith.constant 0 : i32
    %c0_i32_0 = arith.constant 0 : i32
    return %arg0, %c0_i32 : i32, i32
  }
  func.func @transform_2(%arg0: i32) -> (i32, i32, i32) {
    %c0_i32 = arith.constant 0 : i32
    %c0_i32_0 = arith.constant 0 : i32
    %c0_i32_1 = arith.constant 0 : i32
    return %arg0, %c0_i32, %c0_i32_0 : i32, i32, i32
  }
}

</mosaic_0001>

<bundles_post_ra>
// kernel: tpu_custom_call.1
= control target key start
LH: loop header
LB: loop body
LE: loop exit
PB: predicated region body
PF: predicated region fallthrough
CT: control target
= control target key end

     0   :  { %7 = vsyncpa [#allocation3], 0  ;;  %s231_s0 = inlined_call_operand.hbm [shape: f32[1,512], index: 0, kind: input, shape index: {}]   ;;  %s232_s1 = inlined_call_operand.hbm [shape: f32[1,512], index: 1, kind: input, shape index: {}]   ;;  %s233_s2 = inlined_call_operand.hbm [shape: f32[1,8,128], index: 2, kind: output, shape index: {}]  }
   0x1   :  { %8 = vsyncpa [#allocation6], 0 }
   0x2   :  { %9 = vsyncpa [#allocation4], 0  ;;  %s177_s9 = smov [#allocation2]   ;;  %s178_s11 = smov [#allocation5]  }
   0x3   :  { %s16_s10 = sshll.u32 %s177_s9, 4  ;;  %s26_s12 = sshll.u32 %s178_s11, 4  ;;  %s17_s10 = int_to_ptr.vmem [resolvable:$true] %s16_s10  ;;  %s27_s12 = int_to_ptr.vmem [resolvable:$true] %s26_s12 }
   0x4   :  { %s105_s15 = scalar_lea.hbm %s231_s0, 64 }
   0x5   :  { %p106_p0 = scmp.ne.s32.totalorder %s231_s0, %s105_s15  ;;  %p109_p1 = scmp.lt.u32.totalorder %s105_s15, %s231_s0 }
   0x7   :  { %p111_p2 = pnand %p109_p1, %p106_p0 }
   0x9   :  { %114 = shalt.err (!%p111_p2)
}
   0xa   :  { %s115_s20 = scalar_lea.vmem %s17_s10, 64  ;;  %p120_p4 = scmp.lt.s32.totalorder %s17_s10, %s17_s10 }
   0xb   :  { %p116_p3 = scmp.ne.s32.totalorder %s17_s10, %s115_s20  ;;  %p121_p5 = scmp.lt.s32.totalorder %s115_s20, %s115_s20 }
   0xd   :  { %p122_p6 = por %p121_p5, %p120_p4 }
   0xf   :  { %p123_p7 = pnand %p122_p6, %p116_p3 }
  0x11   :  { %126 = shalt.err (!%p123_p7)
}
  0x12   :  { %19 = dma.hbm_to_vmem [thread:$0]  %s231_s0, 64, %s17_s10, [#allocation3]  }
  0x13   :  { %s127_s25 = scalar_lea.hbm %s232_s1, 64 }
  0x14   :  { %p128_p8 = scmp.ne.s32.totalorder %s232_s1, %s127_s25  ;;  %p131_p9 = scmp.lt.u32.totalorder %s127_s25, %s232_s1 }
  0x16   :  { %p133_p10 = pnand %p131_p9, %p128_p8 }
  0x18   :  { %136 = shalt.err (!%p133_p10)
}
  0x19   :  { %s137_s30 = scalar_lea.vmem %s27_s12, 64  ;;  %p142_p12 = scmp.lt.s32.totalorder %s27_s12, %s27_s12 }
  0x1a   :  { %p138_p11 = scmp.ne.s32.totalorder %s27_s12, %s137_s30  ;;  %p143_p13 = scmp.lt.s32.totalorder %s137_s30, %s137_s30 }
  0x1c   :  { %p144_p0 = por %p143_p13, %p142_p12 }
  0x1e   :  { %p145_p1 = pnand %p144_p0, %p138_p11 }
  0x20   :  { %148 = shalt.err (!%p145_p1)
}
  0x21   :  { %29 = dma.hbm_to_vmem [thread:$0]  %s232_s1, 64, %s27_s12, [#allocation6]  }
  0x22   :  { %171 = dma.done.wait [#allocation3], 64  }
  0x23   :  { %172 = vsyncadd [#allocation3], 4294967232 }
  0x24   :  { %173 = dma.done.wait [#allocation6], 64  }
  0x25   :  { %174 = vsyncadd [#allocation6], 4294967232  ;;  %v45_v0 = vlaneseq  ;;  %v36_v2 = vld [vmem:[#allocation2] sm:$0xf]  ;;  %v37_v3 = vld [vmem:[#allocation5] sm:$0xf] }
  0x26   :  { %vm38_vm0 = vcmp.le.f32.partialorder %v36_v2, -100.0  ;;  %vm40_vm1 = vcmp.le.f32.partialorder %v37_v3, -100.0  ;;  %vm65_vm2 = vcmask 1040384   ;;  %s179_s1 = smov [#allocation7]  }
  0x27   :  { %v46_v1 = vshrl.u32 %v45_v0, 7  ;;  %v39_v4 = vsel %vm38_vm0, 0.0, %v36_v2  ;;  %v41_v5 = vsel %vm40_vm1, 0.0, %v37_v3  ;;  %s90_s4 = sshll.u32 %s179_s1, 4  ;;  %s91_s4 = int_to_ptr.vmem [resolvable:$true] %s90_s4 }
  0x28   :  { %v42_v7 = vsub.f32 %v39_v4, %v41_v5  ;;  %s149_s6 = scalar_lea.vmem %s91_s4, 128  ;;  %p154_p3 = scmp.lt.s32.totalorder %s91_s4, %s91_s4 }
  0x29   :  { %v47_v6 = vsub.s32 0, %v46_v1  ;;  %v51_v8 = vsub.s32 1, %v46_v1  ;;  %v55_v9 = vsub.s32 2, %v46_v1  ;;  %v59_v10 = vsub.s32 3, %v46_v1  ;;  %p150_p2 = scmp.ne.s32.totalorder %s91_s4, %s149_s6  ;;  %p155_p4 = scmp.lt.s32.totalorder %s149_s6, %s149_s6 }
  0x2a   :  { %v43_v11 = vmul.f32 %v42_v7, %v42_v7 }
  0x2b   :  { %p156_p5 = por %p155_p4, %p154_p3 }
  0x2c   :  { %v48_v12 = vrot.slane %v43_v11, %v47_v6  ;;  %v52_v13 = vrot.slane %v43_v11, %v51_v8  ;;  %v56_v14 = vrot.slane %v43_v11, %v55_v9  ;;  %v60_v15 = vrot.slane %v43_v11, %v59_v10 }
  0x2d   :  { %p157_p6 = pnand %p156_p5, %p150_p2 }
  0x2e   :  { %v66_v16 = vsel %vm65_vm2, %v48_v12, 0.0  ;;  %v67_v17 = vsel %vm65_vm2, %v52_v13, 0.0  ;;  %v69_v18 = vsel %vm65_vm2, %v56_v14, 0.0  ;;  %v71_v20 = vsel %vm65_vm2, %v60_v15, 0.0 }
  0x2f   :  { %v68_v19 = vadd.f32 %v67_v17, %v66_v16 }
  0x31   :  { %v70_v21 = vadd.f32 %v69_v18, %v68_v19 }
  0x33   :  { %v72_v22 = vadd.f32 %v71_v20, %v70_v21 }
  0x35   :  { %73 = vadd.xlane.f32.xlu0 %v72_v22 }
  0xc2   :  { %v74_v23 = vpop.xlane.xlu0 %73 }
  0xc3   :  { %v75_v24 = vrot.slane %v74_v23, 4 }
  0xc5   :  { %v76_v25 = vadd.f32 %v75_v24, %v74_v23 }
  0xc7   :  { %v77_v26 = vrot.slane %v76_v25, 2 }
  0xc9   :  { %v78_v27 = vadd.f32 %v77_v26, %v76_v25 }
  0xcb   :  { %v79_v28 = vrot.slane %v78_v27, 1 }
  0xcd   :  { %v80_v29 = vadd.f32 %v79_v28, %v78_v27 }
  0xcf   :  { %100 = vpush %v80_v29 }
 0x100   :  { %s101_s5 = spop %100 }
 0x101   :  { %v82_v30 = vstv %s101_s5 }
 0x102   :  { %83 = vst [vmem:[#allocation7] sm:$0xff] %v82_v30 }
 0x103   :  { %160 = shalt.err (!%p157_p6)
}
 0x104   :  { %s161_s9 = scalar_lea.hbm %s233_s2, 128 }
 0x105   :  { %p162_p7 = scmp.ne.s32.totalorder %s233_s2, %s161_s9  ;;  %p165_p8 = scmp.lt.u32.totalorder %s161_s9, %s233_s2 }
 0x107   :  { %p167_p9 = pnand %p165_p8, %p162_p7 }
 0x109   :  { %170 = shalt.err (!%p167_p9)
}
 0x10a   :  { %93 = dma.vmem_to_hbm [thread:$0]  %s91_s4, 128, %s233_s2, [#allocation4]  }
 0x10b   :  { %175 = dma.done.wait [#allocation4], 128  }
 0x10c   :  { %176 = vsyncadd [#allocation4], 4294967168 }
 0x10d   :  { %97 = vsyncpa [#allocation3], 1 }
 0x10e   :  { %98 = vsyncpa [#allocation6], 1 }
 0x10f   :  { %99 = vsyncpa [#allocation4], 1 }

</bundles_post_ra>
